<compile_context>
chip_gen: v7x
topology: tpu7x:2x2x1
jax: 0.10.0
libtpu: 0.0.40
codegen_flags: <defaults>
</compile_context>

<pallas_src>
import functools

import jax
import jax.numpy as jnp
from jax.experimental import pallas as pl
from jax.experimental.pallas import tpu as pltpu

_LANE = 128
_SUBLANE = 8


def _round_up(x, m):
    return ((x + m - 1) // m) * m


def _vmem_capacity_bytes():
    """Physical VMEM per TensorCore; conservative fallback if the query fails."""
    try:
        return int(pltpu.get_tpu_info().vmem_capacity_bytes)
    except Exception:
        return 64 * 1024 * 1024  # v7x per-TC size == safe lower bound everywhere


def _resident_spec(shape):
    """Grid-invariant weight/bias spec: resident in VMEM across the whole grid.

    Single-buffered when supported -- the block never changes, so the default
    2-deep pipelining would only waste VMEM (the biggest single VMEM lever).
    """
    zeros = (0,) * len(shape)
    index_map = lambda i: zeros
    try:
        return pl.BlockSpec(shape, index_map, pipeline_mode=pl.Buffered(1))
    except TypeError:  # older BlockSpec without pipeline_mode: fall back to default
        return pl.BlockSpec(shape, index_map)


def _mlp_kernel(x_ref, w1_ref, b1_ref, w2_ref, b2_ref, w3_ref, b3_ref, o_ref):
    # fc1 + ReLU : bf16 MXU matmul, f32 accumulation; bias/ReLU in f32.
    h1 = jnp.dot(x_ref[...], w1_ref[...], preferred_element_type=jnp.float32)
    h1 = jnp.maximum(h1 + b1_ref[...], 0.0)
    # fc2 + ReLU
    h2 = jnp.dot(h1.astype(w2_ref.dtype), w2_ref[...],
                 preferred_element_type=jnp.float32)
    h2 = jnp.maximum(h2 + b2_ref[...], 0.0)
    # fc_final (logits, no activation)
    logits = jnp.dot(h2.astype(w3_ref.dtype), w3_ref[...],
                     preferred_element_type=jnp.float32)
    o_ref[...] = (logits + b3_ref[...]).astype(o_ref.dtype)


def prepare_params(w1, b1, w2, b2, w3, b3, *, compute_dtype=jnp.bfloat16):
    """Pad every feature dim to a multiple of 128 and cast weights for the MXU.

    Done ONCE (not per forward call) so the per-call wrapper only touches x.
    Weights are (in, out), i.e. the transpose of torch.nn.Linear.weight.
    Returns (padded_params_tuple, num_classes).
    Use compute_dtype=jnp.float32 if strict f32 parity with PyTorch is needed.
    """
    F, H1 = w1.shape
    H2 = w2.shape[1]
    C = w3.shape[1]
    Fp, H1p, H2p, Cp = (_round_up(d, _LANE) for d in (F, H1, H2, C))

    def pad2(a, rows, cols, dtype):
        a = a.reshape(a.shape[0] if a.ndim == 2 else 1, -1)
        buf = jnp.zeros((rows, cols), dtype)
        return buf.at[: a.shape[0], : a.shape[1]].set(a.astype(dtype))

    w1p = pad2(w1, Fp, H1p, compute_dtype)
    w2p = pad2(w2, H1p, H2p, compute_dtype)
    w3p = pad2(w3, H2p, Cp, compute_dtype)
    b1p = pad2(b1, 1, H1p, jnp.float32)
    b2p = pad2(b2, 1, H2p, jnp.float32)
    b3p = pad2(b3, 1, Cp, jnp.float32)
    return (w1p, b1p, w2p, b2p, w3p, b3p), C


@functools.partial(jax.jit,
                   static_argnames=("num_classes", "block_b", "out_dtype"))
def mlp_forward(x, w1p, b1p, w2p, b2p, w3p, b3p, *, num_classes,
                block_b=None, out_dtype=jnp.float32):
    """Fused 3-layer MLP forward on pre-padded params (see prepare_params).

    x : (B, F) float32 ; returns logits (B, num_classes) in out_dtype.
    """
    B, F = x.shape
    Fp, H1p = w1p.shape
    H2p = w2p.shape[1]
    Cp = w3p.shape[1]
    compute_dtype = w1p.dtype
    cbytes = jnp.dtype(compute_dtype).itemsize
    obytes = jnp.dtype(out_dtype).itemsize

    # Per-call work on x only (weights were padded/cast once in prepare_params).
    if F == Fp:
        xp = x if x.dtype == compute_dtype else x.astype(compute_dtype)
    else:
        xp = jnp.zeros((B, Fp), compute_dtype).at[:, :F].set(
            x.astype(compute_dtype))

    capacity = _vmem_capacity_bytes()            # 128 MiB v5e/v6e, 64 MiB/TC v7x
    vmem_limit = int(0.85 * capacity)
    budget = int(0.70 * capacity)                # compiler / MXU-staging headroom

    if block_b is None:
        # Resident, single-buffered weights + biases.
        weight_bytes = cbytes * (Fp * H1p + H1p * H2p + H2p * Cp)
        bias_bytes = 4 * (H1p + H2p + Cp)
        # Per batch row: x tile (2-buffered) + out tile (2-buffered)
        # + f32 h1/h2 + their compute-dtype copies fed to the next matmul,
        # with ~20% headroom.
        per_row = (2 * cbytes * Fp + 2 * obytes * Cp
                   + (4 + cbytes) * (H1p + H2p))
        per_row = int(per_row * 1.2)
        cand = min(1024, _round_up(B, _SUBLANE))
        while cand > _SUBLANE and weight_bytes + bias_bytes + cand * per_row > budget:
            cand //= 2
        block_b = max(_SUBLANE, _round_up(cand, _SUBLANE))
        # Split across >= 2 grid steps only when each shard still gives the MXU
        # a substantial M (>= 256 rows); tiny batches run as one grid step.
        if pl.cdiv(B, block_b) < 2:
            half = _round_up(pl.cdiv(B, 2), _SUBLANE)
            if half >= 256:
                block_b = half
        # TODO(synk): add a K/N-tiled grid axis (f32 VMEM accumulator with
        # pl.when init/finalize) for MLPs whose weights alone exceed the VMEM
        # budget; shrinking block_b cannot fix that case (bites first on v7x).

    grid = (pl.cdiv(B, block_b),)

    flops = 2 * B * (Fp * H1p + H1p * H2p + H2p * Cp)
    bytes_accessed = (B * Fp * cbytes
                      + (Fp * H1p + H1p * H2p + H2p * Cp) * cbytes
                      + (H1p + H2p + Cp) * 4
                      + B * Cp * obytes)

    out_padded = pl.pallas_call(
        _mlp_kernel,
        out_shape=jax.ShapeDtypeStruct((B, Cp), out_dtype),
        grid_spec=pltpu.PrefetchScalarGridSpec(
            num_scalar_prefetch=0,
            grid=grid,
            in_specs=[
                # batch tile of the (padded) input, streamed per grid step
                pl.BlockSpec((block_b, Fp), lambda i: (i, 0)),
                # weights / biases: full padded arrays, resident & single-buffered
                _resident_spec((Fp, H1p)),
                _resident_spec((1, H1p)),
                _resident_spec((H1p, H2p)),
                _resident_spec((1, H2p)),
                _resident_spec((H2p, Cp)),
                _resident_spec((1, Cp)),
            ],
            out_specs=pl.BlockSpec((block_b, Cp), lambda i: (i, 0)),
        ),
        compiler_params=pltpu.CompilerParams(
            dimension_semantics=("parallel",),
            vmem_limit_bytes=vmem_limit,
        ),
        cost_estimate=pl.CostEstimate(
            flops=int(flops),
            transcendentals=0,
            bytes_accessed=int(bytes_accessed),
        ),
    )(xp, w1p, b1p, w2p, b2p, w3p, b3p)

    # Slice the lane-padded logits back to the true class count.
    return out_padded[:, :num_classes]


def init_params(key, num_features, num_classes, hidden_sizes):
    """Deterministic init mirroring torch.nn.Linear's default (uniform +/- 1/sqrt(fan_in))."""
    assert len(hidden_sizes) >= 2
    dims = [num_features, hidden_sizes[0], hidden_sizes[1], num_classes]
    params = []
    for i in range(3):
        fan_in, fan_out = dims[i], dims[i + 1]
        key, kw, kb = jax.random.split(key, 3)
        bound = 1.0 / (fan_in ** 0.5)
        w = jax.random.uniform(kw, (fan_in, fan_out), jnp.float32, -bound, bound)
        b = jax.random.uniform(kb, (1, fan_out), jnp.float32, -bound, bound)
        params += [w, b]
    return params


def mlp_reference(x, w1, b1, w2, b2, w3, b3, compute_dtype=jnp.bfloat16):
    """Pure-JAX reference mirroring the kernel's bf16-input / f32-accumulate math."""
    r = lambda a: a.astype(compute_dtype).astype(jnp.float32)
    h1 = jnp.maximum(r(x) @ r(w1) + b1.reshape(1, -1), 0.0)
    h2 = jnp.maximum(r(h1) @ r(w2) + b2.reshape(1, -1), 0.0)
    return r(h2) @ r(w3) + b3.reshape(1, -1)


if __name__ == "__main__":
    # Small shapes consistent with the module: num_features=32, hidden=[64, 48],
    # num_classes=16, batch=16 (now runs as a single full-width MXU pass).
    num_features, num_classes = 32, 16
    hidden_sizes = [64, 48]
    batch = 16

    key = jax.random.PRNGKey(0)
    key, kx = jax.random.split(key)
    x = jax.random.normal(kx, (batch, num_features), jnp.float32)
    w1, b1, w2, b2, w3, b3 = init_params(key, num_features, num_classes, hidden_sizes)

    # Pad / cast weights ONCE, outside the per-call path.
    (w1p, b1p, w2p, b2p, w3p, b3p), n_cls = prepare_params(w1, b1, w2, b2, w3, b3)

    logits = mlp_forward(x, w1p, b1p, w2p, b2p, w3p, b3p, num_classes=n_cls)
    logits = jax.block_until_ready(logits)

    ref = mlp_reference(x, w1, b1, w2, b2, w3, b3)
    assert logits.shape == (batch, num_classes)
    assert jnp.allclose(logits, ref, atol=2e-3, rtol=2e-3), "mismatch vs reference"

    print("KERNEL_OK")
</pallas_src>

<mosaic_0001>
module attributes {stable_mosaic.version = 11 : i64} {
  func.func @_mlp_kernel(%arg0: i32, %arg1: memref<16x128xbf16, #tpu.memory_space<vmem>>, %arg2: memref<128x128xbf16, #tpu.memory_space<vmem>>, %arg3: memref<1x128xf32, #tpu.memory_space<vmem>>, %arg4: memref<128x128xbf16, #tpu.memory_space<vmem>>, %arg5: memref<1x128xf32, #tpu.memory_space<vmem>>, %arg6: memref<128x128xbf16, #tpu.memory_space<vmem>>, %arg7: memref<1x128xf32, #tpu.memory_space<vmem>>, %arg8: memref<16x128xf32, #tpu.memory_space<vmem>>) attributes {dimension_semantics = [#tpu.dimension_semantics<parallel>], iteration_bounds = array<i64: 1>, scalar_prefetch = 0 : i64, scratch_operands = 0 : i64, tpu.core_type = #tpu.core_type<tc>, window_params = [{transform_indices = @transform_0, window_bounds = array<i64: 16, 128>}, {pipeline_mode = #tpu.pipeline_mode<synchronous>, transform_indices = @transform_1, window_bounds = array<i64: 128, 128>}, {pipeline_mode = #tpu.pipeline_mode<synchronous>, transform_indices = @transform_2, window_bounds = array<i64: 1, 128>}, {pipeline_mode = #tpu.pipeline_mode<synchronous>, transform_indices = @transform_3, window_bounds = array<i64: 128, 128>}, {pipeline_mode = #tpu.pipeline_mode<synchronous>, transform_indices = @transform_4, window_bounds = array<i64: 1, 128>}, {pipeline_mode = #tpu.pipeline_mode<synchronous>, transform_indices = @transform_5, window_bounds = array<i64: 128, 128>}, {pipeline_mode = #tpu.pipeline_mode<synchronous>, transform_indices = @transform_6, window_bounds = array<i64: 1, 128>}, {transform_indices = @transform_7, window_bounds = array<i64: 16, 128>}]} {
    %c0 = arith.constant 0 : index
    %c0_0 = arith.constant 0 : index
    %0 = vector.load %arg1[%c0, %c0_0] : memref<16x128xbf16, #tpu.memory_space<vmem>>, vector<16x128xbf16>
    %c0_1 = arith.constant 0 : index
    %c0_2 = arith.constant 0 : index
    %1 = vector.load %arg2[%c0_1, %c0_2] : memref<128x128xbf16, #tpu.memory_space<vmem>>, vector<128x128xbf16>
    %cst = arith.constant dense<0.000000e+00> : vector<16x128xf32>
    %2 = tpu.matmul %0, %1, %cst {dimension_numbers = #tpu.dot_dimension_numbers<[1], [0], [0], [1], [0, 0, 1, 1], [], []>} : vector<16x128xbf16>, vector<128x128xbf16>, vector<16x128xf32> -> vector<16x128xf32>
    %c0_3 = arith.constant 0 : index
    %c0_4 = arith.constant 0 : index
    %3 = vector.load %arg3[%c0_3, %c0_4] : memref<1x128xf32, #tpu.memory_space<vmem>>, vector<1x128xf32>
    %4 = vector.broadcast %3 : vector<1x128xf32> to vector<16x128xf32>
    %5 = arith.addf %2, %4 : vector<16x128xf32>
    %cst_5 = arith.constant 0.000000e+00 : f32
    %6 = vector.broadcast %cst_5 : f32 to vector<16x128xf32>
    %7 = arith.maximumf %5, %6 : vector<16x128xf32>
    %8 = arith.truncf %7 : vector<16x128xf32> to vector<16x128xbf16>
    %c0_6 = arith.constant 0 : index
    %c0_7 = arith.constant 0 : index
    %9 = vector.load %arg4[%c0_6, %c0_7] : memref<128x128xbf16, #tpu.memory_space<vmem>>, vector<128x128xbf16>
    %cst_8 = arith.constant dense<0.000000e+00> : vector<16x128xf32>
    %10 = tpu.matmul %8, %9, %cst_8 {dimension_numbers = #tpu.dot_dimension_numbers<[1], [0], [0], [1], [0, 0, 1, 1], [], []>} : vector<16x128xbf16>, vector<128x128xbf16>, vector<16x128xf32> -> vector<16x128xf32>
    %c0_9 = arith.constant 0 : index
    %c0_10 = arith.constant 0 : index
    %11 = vector.load %arg5[%c0_9, %c0_10] : memref<1x128xf32, #tpu.memory_space<vmem>>, vector<1x128xf32>
    %12 = vector.broadcast %11 : vector<1x128xf32> to vector<16x128xf32>
    %13 = arith.addf %10, %12 : vector<16x128xf32>
    %cst_11 = arith.constant 0.000000e+00 : f32
    %14 = vector.broadcast %cst_11 : f32 to vector<16x128xf32>
    %15 = arith.maximumf %13, %14 : vector<16x128xf32>
    %16 = arith.truncf %15 : vector<16x128xf32> to vector<16x128xbf16>
    %c0_12 = arith.constant 0 : index
    %c0_13 = arith.constant 0 : index
    %17 = vector.load %arg6[%c0_12, %c0_13] : memref<128x128xbf16, #tpu.memory_space<vmem>>, vector<128x128xbf16>
    %cst_14 = arith.constant dense<0.000000e+00> : vector<16x128xf32>
    %18 = tpu.matmul %16, %17, %cst_14 {dimension_numbers = #tpu.dot_dimension_numbers<[1], [0], [0], [1], [0, 0, 1, 1], [], []>} : vector<16x128xbf16>, vector<128x128xbf16>, vector<16x128xf32> -> vector<16x128xf32>
    %c0_15 = arith.constant 0 : index
    %c0_16 = arith.constant 0 : index
    %19 = vector.load %arg7[%c0_15, %c0_16] : memref<1x128xf32, #tpu.memory_space<vmem>>, vector<1x128xf32>
    %20 = vector.broadcast %19 : vector<1x128xf32> to vector<16x128xf32>
    %21 = arith.addf %18, %20 : vector<16x128xf32>
    %c0_17 = arith.constant 0 : index
    %c0_18 = arith.constant 0 : index
    %22 = vector.load %arg8[%c0_17, %c0_18] : memref<16x128xf32, #tpu.memory_space<vmem>>, vector<16x128xf32>
    tpu.vector_store %arg8[%c0_17, %c0_18], %21 {strides = array<i32>} : memref<16x128xf32, #tpu.memory_space<vmem>>, vector<16x128xf32>,
    return
  }
  func.func @transform_0(%arg0: i32) -> (i32, i32) {
    %c0_i32 = arith.constant 0 : i32
    %c0_i32_0 = arith.constant 0 : i32
    return %arg0, %c0_i32 : i32, i32
  }
  func.func @transform_1(%arg0: i32) -> (i32, i32) {
    %c0_i32 = arith.constant 0 : i32
    %c0_i32_0 = arith.constant 0 : i32
    %c0_i32_1 = arith.constant 0 : i32
    return %c0_i32, %c0_i32_0 : i32, i32
  }
  func.func @transform_2(%arg0: i32) -> (i32, i32) {
    %c0_i32 = arith.constant 0 : i32
    %c0_i32_0 = arith.constant 0 : i32
    %c0_i32_1 = arith.constant 0 : i32
    return %c0_i32, %c0_i32_0 : i32, i32
  }
  func.func @transform_3(%arg0: i32) -> (i32, i32) {
    %c0_i32 = arith.constant 0 : i32
    %c0_i32_0 = arith.constant 0 : i32
    %c0_i32_1 = arith.constant 0 : i32
    return %c0_i32, %c0_i32_0 : i32, i32
  }
  func.func @transform_4(%arg0: i32) -> (i32, i32) {
    %c0_i32 = arith.constant 0 : i32
    %c0_i32_0 = arith.constant 0 : i32
    %c0_i32_1 = arith.constant 0 : i32
    return %c0_i32, %c0_i32_0 : i32, i32
  }
  func.func @transform_5(%arg0: i32) -> (i32, i32) {
    %c0_i32 = arith.constant 0 : i32
    %c0_i32_0 = arith.constant 0 : i32
    %c0_i32_1 = arith.constant 0 : i32
    return %c0_i32, %c0_i32_0 : i32, i32
  }
  func.func @transform_6(%arg0: i32) -> (i32, i32) {
    %c0_i32 = arith.constant 0 : i32
    %c0_i32_0 = arith.constant 0 : i32
    %c0_i32_1 = arith.constant 0 : i32
    return %c0_i32, %c0_i32_0 : i32, i32
  }
  func.func @transform_7(%arg0: i32) -> (i32, i32) {
    %c0_i32 = arith.constant 0 : i32
    %c0_i32_0 = arith.constant 0 : i32
    return %arg0, %c0_i32 : i32, i32
  }
}

</mosaic_0001>

<bundles_post_ra>
// kernel: mlp_forward.1
= control target key start
LH: loop header
LB: loop body
LE: loop exit
PB: predicated region body
PF: predicated region fallthrough
CT: control target
= control target key end

     0   :  { %12 = vsyncpa [#allocation3], 0  ;;  %s897_s0 = inlined_call_operand.vmem [shape: bf16[16,128], index: 0, kind: input, shape index: {}]   ;;  %s898_s1 = inlined_call_operand.hbm [shape: bf16[128,128], index: 1, kind: input, shape index: {}]   ;;  %s899_s2 = inlined_call_operand.hbm [shape: f32[1,128], index: 2, kind: input, shape index: {}]   ;;  %s900_s3 = inlined_call_operand.hbm [shape: bf16[128,128], index: 3, kind: input, shape index: {}]   ;;  %s901_s4 = inlined_call_operand.hbm [shape: f32[1,128], index: 4, kind: input, shape index: {}]   ;;  %s902_s5 = inlined_call_operand.vmem [shape: bf16[128,128], index: 5, kind: input, shape index: {}]   ;;  %s903_s6 = inlined_call_operand.vmem [shape: f32[1,128], index: 6, kind: input, shape index: {}]   ;;  %s904_s7 = inlined_call_operand.hbm [shape: f32[16,128], index: 7, kind: output, shape index: {}]  }
   0x1   :  { %13 = vsyncpa [#allocation6], 0 }
   0x2   :  { %14 = vsyncpa [#allocation9], 0 }
   0x3   :  { %15 = vsyncpa [#allocation4], 0  ;;  %s719_s24 = smov [#allocation5]   ;;  %s720_s26 = smov [#allocation2]  }
   0x4   :  { %s36_s25 = sshll.u32 %s719_s24, 4  ;;  %s23_s27 = sshll.u32 %s720_s26, 4  ;;  %s37_s25 = int_to_ptr.vmem [resolvable:$true] %s36_s25  ;;  %s770_s27 = int_to_ptr.vmem [resolvable:$true] %s23_s27 }
   0x5   :  { %s601_s30 = scalar_lea.hbm %s899_s2, 16 }
   0x6   :  { %p602_p0 = scmp.ne.s32.totalorder %s899_s2, %s601_s30  ;;  %p605_p1 = scmp.lt.u32.totalorder %s601_s30, %s899_s2 }
   0x8   :  { %p607_p2 = pnand %p605_p1, %p602_p0 }
   0xa   :  { %610 = shalt.err (!%p607_p2)
}
   0xb   :  { %s611_s12 = scalar_lea.vmem %s37_s25, 16  ;;  %s615_s13 = scalar_lea.vmem %s37_s25, 32 }
   0xc   :  { %p612_p3 = scmp.ne.s32.totalorder %s37_s25, %s611_s12  ;;  %p616_p4 = scmp.lt.s32.totalorder %s37_s25, %s37_s25 }
   0xd   :  { %p617_p5 = scmp.lt.s32.totalorder %s615_s13, %s611_s12 }
   0xf   :  { %p618_p6 = por %p617_p5, %p616_p4 }
  0x11   :  { %p619_p7 = pnand %p618_p6, %p612_p3 }
  0x13   :  { %622 = shalt.err (!%p619_p7)
}
  0x14   :  { %39 = dma.hbm_to_vmem [thread:$0]  %s899_s2, 16, %s37_s25, [#allocation6]  }
  0x15   :  { %s623_s18 = scalar_lea.hbm %s898_s1, 1024 }
  0x16   :  { %p624_p8 = scmp.ne.s32.totalorder %s898_s1, %s623_s18  ;;  %p627_p9 = scmp.lt.u32.totalorder %s623_s18, %s898_s1 }
  0x18   :  { %p629_p10 = pnand %p627_p9, %p624_p8 }
  0x1a   :  { %632 = shalt.err (!%p629_p10)
}
  0x1b   :  { %s633_s23 = scalar_lea.vmem %s770_s27, 1024  ;;  %p638_p12 = scmp.lt.s32.totalorder %s770_s27, %s770_s27 }
  0x1c   :  { %p634_p11 = scmp.ne.s32.totalorder %s770_s27, %s633_s23  ;;  %p639_p13 = scmp.lt.s32.totalorder %s633_s23, %s633_s23 }
  0x1e   :  { %p640_p0 = por %p639_p13, %p638_p12 }
  0x20   :  { %p641_p1 = pnand %p640_p0, %p634_p11 }
  0x22   :  { %644 = shalt.err (!%p641_p1)
}
  0x23   :  { %s721_s2 = smov 64   ;;  %s722_s24 = smov 4  }
  0x24   :  { %29 = dma.hbm_to_vmem [thread:$0]  %s898_s1, 1024, %s770_s27, [#allocation3], %s721_s2, %s721_s2, %s722_s24  }
  0x25   :  { %s723_s28 = smov [#allocation7]   ;;  %s724_s30 = smov [#allocation8]  }
  0x26   :  { %s45_s29 = sshll.u32 %s723_s28, 4  ;;  %s58_s8 = sshll.u32 %s724_s30, 4  ;;  %s46_s29 = int_to_ptr.vmem [resolvable:$true] %s45_s29  ;;  %s59_s8 = int_to_ptr.vmem [resolvable:$true] %s58_s8 }
  0x27   :  { %s645_s11 = scalar_lea.hbm %s900_s3, 1024 }
  0x28   :  { %p646_p2 = scmp.ne.s32.totalorder %s900_s3, %s645_s11  ;;  %p649_p3 = scmp.lt.u32.totalorder %s645_s11, %s900_s3 }
  0x2a   :  { %p651_p4 = pnand %p649_p3, %p646_p2 }
  0x2c   :  { %654 = shalt.err (!%p651_p4)
}
  0x2d   :  { %s655_s1 = scalar_lea.vmem %s46_s29, 1024  ;;  %p660_p6 = scmp.lt.s32.totalorder %s46_s29, %s46_s29 }
  0x2e   :  { %p656_p5 = scmp.ne.s32.totalorder %s46_s29, %s655_s1  ;;  %p661_p7 = scmp.lt.s32.totalorder %s655_s1, %s655_s1 }
  0x30   :  { %p662_p8 = por %p661_p7, %p660_p6 }
  0x32   :  { %p663_p9 = pnand %p662_p8, %p656_p5 }
  0x34   :  { %666 = shalt.err (!%p663_p9)
}
  0x35   :  { %51 = dma.hbm_to_vmem [thread:$0]  %s900_s3, 1024, %s46_s29, [#allocation6], %s721_s2, %s721_s2, %s722_s24  }
  0x36   :  { %s667_s19 = scalar_lea.hbm %s901_s4, 16 }
  0x37   :  { %p668_p10 = scmp.ne.s32.totalorder %s901_s4, %s667_s19  ;;  %p671_p11 = scmp.lt.u32.totalorder %s667_s19, %s901_s4 }
  0x39   :  { %p673_p12 = pnand %p671_p11, %p668_p10 }
  0x3b   :  { %676 = shalt.err (!%p673_p12)
}
  0x3c   :  { %s677_s25 = scalar_lea.vmem %s59_s8, 16  ;;  %s681_s26 = scalar_lea.vmem %s59_s8, 32 }
  0x3d   :  { %p678_p13 = scmp.ne.s32.totalorder %s59_s8, %s677_s25  ;;  %p682_p0 = scmp.lt.s32.totalorder %s59_s8, %s59_s8 }
  0x3e   :  { %p683_p1 = scmp.lt.s32.totalorder %s681_s26, %s677_s25 }
  0x40   :  { %p684_p2 = por %p683_p1, %p682_p0 }
  0x42   :  { %p685_p3 = pnand %p684_p2, %p678_p13 }
  0x44   :  { %688 = shalt.err (!%p685_p3)
}
  0x45   :  { %61 = dma.hbm_to_vmem [thread:$0]  %s901_s4, 16, %s59_s8, [#allocation9]  }
  0x46   :  { %711 = dma.done.wait [#allocation3], 1024  }
  0x47   :  { %712 = vsyncadd [#allocation3], 4294966272 }
  0x48   :  { %713 = dma.done.wait [#allocation6], 1040  }
  0x49   :  { %714 = vsyncadd [#allocation6], 4294966256 }
  0x4a   :  { %715 = dma.done.wait [#allocation9], 16  }
  0x4b   :  { %716 = vsyncadd [#allocation9], 4294967280  ;;  %v725_v0 = vmov 0.0   ;;  %vm726_vm0 = vmmov 0   ;;  %v576_v1 = vld [vmem:[#allocation2] sm:$0xff]   ;;  %v577_v2 = vld [vmem:[#allocation2 + $0x8] sm:$0xff]  }
  0x4c   :  { %505 = vmatprep.subr.bf16.mxu0 %v725_v0  ;;  %521 = vmatprep.mubr.msk.bf16.mxu0 %vm726_vm0, %v725_v0  ;;  %v578_v3 = vld [vmem:[#allocation2 + $0x10] sm:$0xff]   ;;  %v585_v4 = vld [vmem:[#allocation7] sm:$0xff]   ;;  %v579_v5 = vld [vmem:[#allocation2 + $0x18] sm:$0xff]   ;;  %s727_s20 = smov [#allocation10]  }
  0x4d   :  { %525 = vmatprep.subr.bf16.mxu1 %v725_v0  ;;  %541 = vmatprep.mubr.msk.bf16.mxu1 %vm726_vm0, %v725_v0  ;;  %v586_v6 = vld [vmem:[#allocation7 + $0x8] sm:$0xff]   ;;  %v580_v7 = vld [vmem:[#allocation2 + $0x20] sm:$0xff]   ;;  %v587_v8 = vld [vmem:[#allocation7 + $0x10] sm:$0xff]   ;;  %s436_s21 = sshll.u32 %s727_s20, 4  ;;  %s437_s21 = int_to_ptr.vmem [resolvable:$true] %s436_s21 }
  0x4e   :  { %506 = vmatpush3.bf16.msra.mxu0 %v576_v1  ;;  %526 = vmatpush3.bf16.msra.mxu1 %v585_v4  ;;  %v581_v9 = vld [vmem:[#allocation2 + $0x28] sm:$0xff]   ;;  %v588_v10 = vld [vmem:[#allocation7 + $0x18] sm:$0xff]   ;;  %v582_v11 = vld [vmem:[#allocation2 + $0x30] sm:$0xff]   ;;  %p694_p5 = scmp.lt.s32.totalorder %s437_s21, %s437_s21 }
  0x4f   :  { %507 = vmatprep.subr.bf16.mxu0 %v725_v0  ;;  %527 = vmatprep.subr.bf16.mxu1 %v725_v0  ;;  %v589_v12 = vld [vmem:[#allocation7 + $0x20] sm:$0xff]   ;;  %v583_v13 = vld [vmem:[#allocation2 + $0x38] sm:$0xff]   ;;  %v590_v14 = vld [vmem:[#allocation7 + $0x28] sm:$0xff]  }
  0x50   :  { %v584_v15 = vld [vmem:[%s897_s0] sm:$0xff]   ;;  %v591_v16 = vld [vmem:[#allocation7 + $0x30] sm:$0xff]   ;;  %v594_v19 = vld [vmem:[%s902_s5 + $0x8] sm:$0xff]  }
  0x51   :  { %v592_v17 = vld [vmem:[#allocation7 + $0x38] sm:$0xff]   ;;  %v595_v20 = vld [vmem:[%s902_s5 + $0x10] sm:$0xff]   ;;  %v598_v23 = vld [vmem:[%s902_s5 + $0x28] sm:$0xff]  }
  0x52   :  { %508 = vmatpush3.bf16.msra.mxu0 %v577_v2  ;;  %528 = vmatpush3.bf16.msra.mxu1 %v586_v6  ;;  %v593_v18 = vld [vmem:[%s902_s5] sm:$0xff]   ;;  %v596_v21 = vld [vmem:[%s902_s5 + $0x18] sm:$0xff]   ;;  %v599_v34 = vld [vmem:[%s902_s5 + $0x30] sm:$0xff]  }
  0x53   :  { %509 = vmatprep.subr.bf16.mxu0 %v725_v0  ;;  %529 = vmatprep.subr.bf16.mxu1 %v725_v0  ;;  %v597_v22 = vld [vmem:[%s902_s5 + $0x20] sm:$0xff]   ;;  %v600_v35 = vld [vmem:[%s902_s5 + $0x38] sm:$0xff]   ;;  %s689_s5 = scalar_lea.vmem %s437_s21, 256 }
  0x54   :  { %v450_v24 = vld [vmem:[#allocation5] ss:$0 sm:$0xff]  ;;  %v460_v36 = vld [vmem:[#allocation8] ss:$0 sm:$0xff]  ;;  %p690_p4 = scmp.ne.s32.totalorder %s437_s21, %s689_s5  ;;  %p695_p6 = scmp.lt.s32.totalorder %s689_s5, %s689_s5 }
  0x55   :  { %v469_v46 = vld [vmem:[%s903_s6] ss:$0 sm:$0xff] }
  0x56   :  { %510 = vmatpush3.bf16.msra.mxu0 %v578_v3  ;;  %530 = vmatpush3.bf16.msra.mxu1 %v587_v8  ;;  %p696_p7 = por %p695_p6, %p694_p5 }
  0x57   :  { %511 = vmatprep.subr.bf16.mxu0 %v725_v0  ;;  %531 = vmatprep.subr.bf16.mxu1 %v725_v0 }
  0x58   :  { %p697_p8 = pnand %p696_p7, %p690_p4 }
  0x5a   :  { %512 = vmatpush3.bf16.msra.mxu0 %v579_v5  ;;  %532 = vmatpush3.bf16.msra.mxu1 %v588_v10 }
  0x5b   :  { %513 = vmatprep.subr.bf16.mxu0 %v725_v0  ;;  %533 = vmatprep.subr.bf16.mxu1 %v725_v0 }
  0x5e   :  { %514 = vmatpush3.bf16.msra.mxu0 %v580_v7  ;;  %534 = vmatpush3.bf16.msra.mxu1 %v589_v12 }
  0x5f   :  { %515 = vmatprep.subr.bf16.mxu0 %v725_v0  ;;  %535 = vmatprep.subr.bf16.mxu1 %v725_v0 }
  0x62   :  { %516 = vmatpush3.bf16.msra.mxu0 %v581_v9  ;;  %536 = vmatpush3.bf16.msra.mxu1 %v590_v14 }
  0x63   :  { %517 = vmatprep.subr.bf16.mxu0 %v725_v0  ;;  %537 = vmatprep.subr.bf16.mxu1 %v725_v0 }
  0x66   :  { %518 = vmatpush3.bf16.msra.mxu0 %v582_v11  ;;  %538 = vmatpush3.bf16.msra.mxu1 %v591_v16 }
  0x67   :  { %519 = vmatprep.subr.bf16.mxu0 %v725_v0  ;;  %539 = vmatprep.subr.bf16.mxu1 %v725_v0 }
  0x6a   :  { %520 = vmatpush3.bf16.msra.mxu0 %v583_v13  ;;  %540 = vmatpush3.bf16.msra.mxu1 %v592_v17 }
  0x6b   :  { %545 = vmatprep.subr.bf16.mxu0 %v725_v0 }
  0x6d   :  { %522 = vmatmul.mubr.bf16.vlgmr.msra.gmra.mrb[0].mxu0 %v584_v15 }
  0x6e   :  { %561 = vmatprep.mubr.msk.bf16.mxu0 %vm726_vm0, %v725_v0  ;;  %546 = vmatpush3.bf16.msra.mxu0 %v593_v18 }
  0x6f   :  { %547 = vmatprep.subr.bf16.mxu0 %v725_v0 }
  0x72   :  { %548 = vmatpush3.bf16.msra.mxu0 %v594_v19 }
  0x73   :  { %549 = vmatprep.subr.bf16.mxu0 %v725_v0 }
  0x76   :  { %550 = vmatpush3.bf16.msra.mxu0 %v595_v20 }
  0x77   :  { %551 = vmatprep.subr.bf16.mxu0 %v725_v0 }
  0x7a   :  { %552 = vmatpush3.bf16.msra.mxu0 %v596_v21 }
  0x7b   :  { %553 = vmatprep.subr.bf16.mxu0 %v725_v0 }
  0x7e   :  { %554 = vmatpush3.bf16.msra.mxu0 %v597_v22 }
  0x7f   :  { %555 = vmatprep.subr.bf16.mxu0 %v725_v0 }
  0x82   :  { %556 = vmatpush3.bf16.msra.mxu0 %v598_v23 }
  0x83   :  { %557 = vmatprep.subr.bf16.mxu0 %v725_v0 }
  0x86   :  { %558 = vmatpush3.bf16.msra.mxu0 %v599_v34 }
  0x87   :  { %559 = vmatprep.subr.bf16.mxu0 %v725_v0 }
  0x8a   :  { %560 = vmatpush3.bf16.msra.mxu0 %v600_v35 }
 0x140   :  { %v192_v25 = vpop.f32.mrb[0].mxu0 }
 0x141   :  { %v193_v26 = vadd.f32 %v450_v24, %v192_v25  ;;  %v523_v27 = vpop.f32.mrb[1].mxu0 }
 0x142   :  { %v195_v28 = vpop.f32.mrb[2].mxu0 }
 0x143   :  { %v196_v29 = vadd.f32 %v450_v24, %v195_v28  ;;  %v524_v30 = vpop.f32.mrb[3].mxu0  ;;  %v199_v31 = vmax.f32 %v193_v26, 0.0 }
 0x145   :  { %v200_v32 = vmax.f32 %v196_v29, 0.0 }
 0x147   :  { %v201_v33 = vpack.c.bf16 %v200_v32, %v199_v31 }
 0x149   :  { %542 = vmatmul.mubr.bf16.vlgmr.msra.gmra.mrb[0].mxu1 %v201_v33 }
 0x21c   :  { %v307_v37 = vpop.f32.mrb[0].mxu1 }
 0x21d   :  { %v308_v38 = vadd.f32 %v460_v36, %v307_v37  ;;  %v543_v39 = vpop.f32.mrb[1].mxu1 }
 0x21e   :  { %v310_v40 = vpop.f32.mrb[2].mxu1 }
 0x21f   :  { %v311_v41 = vadd.f32 %v460_v36, %v310_v40  ;;  %v544_v42 = vpop.f32.mrb[3].mxu1  ;;  %v314_v43 = vmax.f32 %v308_v38, 0.0 }
 0x221   :  { %v315_v44 = vmax.f32 %v311_v41, 0.0 }
 0x223   :  { %v316_v45 = vpack.c.bf16 %v315_v44, %v314_v43 }
 0x225   :  { %562 = vmatmul.mubr.bf16.vlgmr.msra.gmra.mrb[4].mxu0 %v316_v45 }
 0x2f8   :  { %v422_v47 = vpop.f32.mrb[4].mxu0 }
 0x2f9   :  { %v423_v48 = vadd.f32 %v469_v46, %v422_v47  ;;  %v563_v49 = vpop.f32.mrb[5].mxu0 }
 0x2fa   :  { %v425_v50 = vpop.f32.mrb[6].mxu0 }
 0x2fb   :  { %429 = vst [vmem:[#allocation10] sm:$0xff] %v423_v48  ;;  %v426_v51 = vadd.f32 %v469_v46, %v425_v50  ;;  %v564_v52 = vpop.f32.mrb[7].mxu0 }
 0x2fd   :  { %430 = vst [vmem:[#allocation10 + $0x8] sm:$0xff] %v426_v51 }
 0x2fe   :  { %700 = shalt.err (!%p697_p8)
}
 0x2ff   :  { %s701_s23 = scalar_lea.hbm %s904_s7, 256 }
 0x300   :  { %p702_p9 = scmp.ne.s32.totalorder %s904_s7, %s701_s23  ;;  %p705_p10 = scmp.lt.u32.totalorder %s701_s23, %s904_s7 }
 0x302   :  { %p707_p11 = pnand %p705_p10, %p702_p9 }
 0x304   :  { %710 = shalt.err (!%p707_p11)
}
 0x305   :  { %s728_s4 = smov 128   ;;  %s729_s24 = smov 8  }
 0x306   :  { %442 = dma.vmem_to_hbm [thread:$0]  %s437_s21, 256, %s904_s7, [#allocation4], %s728_s4, %s728_s4, %s729_s24  }
 0x307   :  { %717 = dma.done.wait [#allocation4], 256  }
 0x308   :  { %718 = vsyncadd [#allocation4], 4294967040 }
 0x309   :  { %446 = vsyncpa [#allocation3], 1 }
 0x30a   :  { %447 = vsyncpa [#allocation6], 1 }
 0x30b   :  { %448 = vsyncpa [#allocation9], 1 }
 0x30c   :  { %449 = vsyncpa [#allocation4], 1 }

</bundles_post_ra>
